<compile_context>
chip_gen: v6e
topology: v6e:2x2x1
jax: 0.10.0
libtpu: 0.0.40
codegen_flags: <defaults>
</compile_context>

<pallas_src>
import functools

import jax
import jax.numpy as jnp
from jax.experimental import pallas as pl
from jax.experimental.pallas import tpu as pltpu


def _round_up(x, m):
    return ((x + m - 1) // m) * m


_TILE_GRAN = 16  # multiple of both f32 (8) and bf16 (16) sublane packing


# ----------------------------------------------------------------------------
# Fused MLP kernel.
#   x_ref  : [TILE_B, Zp]   bf16  batch tile of the latent input (lane = z_dim)
#   w0_ref : [Zp, P]        bf16  first-layer weight (zero rows above z_dim)
#   w_ref  : [L-1, P, P]    bf16  zero-padded weights for layers 1..L-1
#   b_ref  : [L, 1, P]      f32   zero-padded biases for all layers
#   o_ref  : [TILE_B, P]    bf16  lane-padded output (valid cols sliced outside)
# Zero padding is self-preserving: padded lanes carry 0 through matmul, zero
# bias and ReLU, so no masking is needed inside the kernel.
# ----------------------------------------------------------------------------
def _generator_kernel(x_ref, w0_ref, w_ref, b_ref, o_ref, *, num_layers,
                      relu_mask):
    # Layer 0: [tile, Zp] @ [Zp, P] small-K matmul, f32 accumulation.
    h = jnp.dot(x_ref[...], w0_ref[...],
                preferred_element_type=jnp.float32) + b_ref[0]
    if relu_mask[0]:
        h = jnp.maximum(h, 0.0)
    h = h.astype(jnp.bfloat16)  # carry activations in bf16 between layers

    for layer in range(1, num_layers):      # unrolled at trace time
        w = w_ref[layer - 1]                # [P, P] bf16, static index
        b = b_ref[layer]                    # [1, P] f32
        h = jnp.dot(h, w, preferred_element_type=jnp.float32) + b
        if relu_mask[layer]:
            h = jnp.maximum(h, 0.0)
        if layer < num_layers - 1:
            h = h.astype(jnp.bfloat16)

    o_ref[...] = h.astype(o_ref.dtype)


def pack_params(weights, biases, pad_dim):
    """Pack per-layer [in,out] weights / [out] biases into 3 padded slabs.

    Returns:
      w0     : [Zp, pad_dim]        bf16 (first layer, Zp = round_up(z_dim,16))
      w_slab : [L-1, pad_dim, pad_dim] bf16 (layers 1..L-1)
      b_slab : [L, 1, pad_dim]      f32
    """
    num_layers = len(weights)
    assert num_layers >= 2
    z_dim, out0 = weights[0].shape
    zp = _round_up(z_dim, _TILE_GRAN)

    w0 = jnp.zeros((zp, pad_dim), jnp.bfloat16)
    w0 = w0.at[:z_dim, :out0].set(weights[0].astype(jnp.bfloat16))

    w_slab = jnp.zeros((num_layers - 1, pad_dim, pad_dim), jnp.bfloat16)
    for i, w in enumerate(weights[1:]):
        in_d, out_d = w.shape
        w_slab = w_slab.at[i, :in_d, :out_d].set(w.astype(jnp.bfloat16))

    b_slab = jnp.zeros((num_layers, 1, pad_dim), jnp.float32)
    for i, b in enumerate(biases):
        b_slab = b_slab.at[i, 0, :b.shape[0]].set(b.astype(jnp.float32))

    return w0, w_slab, b_slab


def _choose_tile(batch, tile_b):
    """Batch tile: multiple of 16, <= tile_b, and small enough that the grid
    has >= 2 tiles whenever B > 16 (so both v7x TensorCores get work)."""
    tile_b = max(_TILE_GRAN, _round_up(tile_b, _TILE_GRAN))
    half = _round_up(max((batch + 1) // 2, 1), _TILE_GRAN)
    return min(tile_b, half)


def generator_pallas(z, w0, w_slab, b_slab, relu_mask, out_dim, *,
                     tile_b=1024, out_dtype=jnp.bfloat16):
    """Fused Generator forward pass.

    z:      [B, z_dim] latent input (any float dtype)
    w0:     [Zp, P]    bf16 packed first-layer weight
    w_slab: [L-1, P, P] bf16 packed weights for the remaining layers
    b_slab: [L, 1, P]  f32 packed biases
    Returns [B, out_dim] in `out_dtype`.
    """
    B, z_dim = z.shape
    Zp, P = w0.shape
    L = w_slab.shape[0] + 1
    assert b_slab.shape == (L, 1, P)
    assert z_dim <= Zp and out_dim <= P
    assert len(relu_mask) == L

    if B == 0:
        return jnp.zeros((0, out_dim), out_dtype)

    tile = _choose_tile(B, tile_b)
    b_pad = _round_up(B, tile)

    # Batch-padded (only) latent slab, bf16: ~z_dim lanes, not 128.
    z_p = jnp.zeros((b_pad, Zp), jnp.bfloat16)
    z_p = z_p.at[:B, :z_dim].set(z.astype(jnp.bfloat16))

    kernel = functools.partial(
        _generator_kernel,
        num_layers=L,
        relu_mask=tuple(bool(r) for r in relu_mask),
    )

    out = pl.pallas_call(
        kernel,
        grid=(b_pad // tile,),
        in_specs=[
            pl.BlockSpec((tile, Zp), lambda i: (i, 0)),       # x: moves w/ batch
            pl.BlockSpec((Zp, P), lambda i: (0, 0)),          # w0: resident
            pl.BlockSpec((L - 1, P, P), lambda i: (0, 0, 0)), # weights: resident
            pl.BlockSpec((L, 1, P), lambda i: (0, 0, 0)),     # biases: resident
        ],
        out_specs=pl.BlockSpec((tile, P), lambda i: (i, 0)),
        out_shape=jax.ShapeDtypeStruct((b_pad, P), out_dtype),
        compiler_params=pltpu.CompilerParams(
            dimension_semantics=("parallel",),                # 2 TCs on v7x
        ),
    )(z_p, w0, w_slab, b_slab)

    # Lane-dense full-width stores inside the kernel; the valid window is
    # sliced here (stays fused/lazy under jit when a downstream op consumes it).
    return out[:B, :out_dim]


# ----------------------------------------------------------------------------
# Parameter construction mirroring nn.Linear default init (U(+-1/sqrt(in))),
# deterministic via PRNGKey. Layer ordering follows Generator.forward().
# ----------------------------------------------------------------------------
def _init_linear(key, in_dim, out_dim):
    kw, kb = jax.random.split(key)
    bound = 1.0 / (in_dim ** 0.5)
    w = jax.random.uniform(kw, (in_dim, out_dim), jnp.float32, -bound, bound)
    b = jax.random.uniform(kb, (out_dim,), jnp.float32, -bound, bound)
    return w, b


def build_generator(key, x_dim, h_dim1, h_dim2, h_dim3, h_dim4, h_dim5, h_dim6):
    """Replicates Generator.__init__ / Generator.forward layer selection."""
    if h_dim6 > 0:
        dims = [h_dim6, h_dim5, h_dim4, h_dim3, h_dim2, h_dim1, x_dim]
    elif h_dim5 > 0:
        dims = [h_dim5, h_dim4, h_dim3, h_dim2, h_dim1, x_dim]
    elif h_dim4 > 0:
        dims = [h_dim4, h_dim3, h_dim2, h_dim1, x_dim]
    else:
        dims = [h_dim3, h_dim2, h_dim1, x_dim]
    relu = [True] * (len(dims) - 2) + [False]      # ReLU on all but fc1

    keys = jax.random.split(key, len(dims) - 1)
    weights, biases = [], []
    for i in range(len(dims) - 1):
        w, b = _init_linear(keys[i], dims[i], dims[i + 1])
        weights.append(w)
        biases.append(b)
    return weights, biases, relu


def generator_reference(z, weights, biases, relu_mask):
    """Pure-JAX reference with the same numerics (bf16 weights/acts, f32 acc)."""
    h = z.astype(jnp.float32)
    for w, b, r in zip(weights, biases, relu_mask):
        h = jnp.dot(
            h.astype(jnp.bfloat16), w.astype(jnp.bfloat16),
            preferred_element_type=jnp.float32,
        ) + b
        if r:
            h = jnp.maximum(h, 0.0)
    return h


if __name__ == "__main__":
    key = jax.random.PRNGKey(0)
    k_params, k_z = jax.random.split(key)

    # Small shapes consistent with Generator(x_dim, h1..h6); all hidden dims
    # > 0 so the full 6-layer path (fc6..fc2 with ReLU, fc1 linear) runs.
    # batch=32 -> tile=16, grid=(2,): exercises the multi-tile / megacore path.
    batch = 32
    x_dim, h1, h2, h3, h4, h5, h6 = 32, 64, 48, 40, 24, 16, 8

    weights, biases, relu_mask = build_generator(
        k_params, x_dim, h1, h2, h3, h4, h5, h6
    )

    all_dims = [w.shape[0] for w in weights] + [weights[-1].shape[1]]
    pad_dim = _round_up(max(all_dims), 128)       # 128: lane-dense, don't go 256
    w0, w_slab, b_slab = pack_params(weights, biases, pad_dim)

    z = jax.random.normal(k_z, (batch, h6), jnp.float32)   # latent input

    gen = jax.jit(functools.partial(
        generator_pallas, relu_mask=tuple(relu_mask), out_dim=x_dim))
    out = gen(z, w0, w_slab, b_slab)
    out = jax.block_until_ready(out)

    ref = generator_reference(z, weights, biases, relu_mask)
    assert out.shape == (batch, x_dim), out.shape
    assert out.dtype == jnp.bfloat16, out.dtype
    err = float(jnp.max(jnp.abs(out.astype(jnp.float32) - ref)))
    # bf16 output + bf16 weights/acts: tolerance sized for bf16 rounding.
    assert jnp.allclose(out.astype(jnp.float32), ref, atol=2e-2, rtol=2e-2), err

    print("KERNEL_OK")
</pallas_src>

<mosaic_0001>
module attributes {stable_mosaic.version = 11 : i64} {
  func.func @_generator_kernel(%arg0: i32, %arg1: memref<16x16xbf16, #tpu.memory_space<vmem>>, %arg2: memref<16x128xbf16, #tpu.memory_space<vmem>>, %arg3: memref<5x128x128xbf16, #tpu.memory_space<vmem>>, %arg4: memref<6x1x128xf32, #tpu.memory_space<vmem>>, %arg5: memref<16x128xbf16, #tpu.memory_space<vmem>>) attributes {dimension_semantics = [#tpu.dimension_semantics<parallel>], iteration_bounds = array<i64: 2>, scalar_prefetch = 0 : i64, scratch_operands = 0 : i64, tpu.core_type = #tpu.core_type<tc>, window_params = [{transform_indices = @transform_0, window_bounds = array<i64: 16, 16>}, {pipeline_mode = #tpu.pipeline_mode<synchronous>, transform_indices = @transform_1, window_bounds = array<i64: 16, 128>}, {pipeline_mode = #tpu.pipeline_mode<synchronous>, transform_indices = @transform_2, window_bounds = array<i64: 5, 128, 128>}, {pipeline_mode = #tpu.pipeline_mode<synchronous>, transform_indices = @transform_3, window_bounds = array<i64: 6, 1, 128>}, {transform_indices = @transform_4, window_bounds = array<i64: 16, 128>}]} {
    %c0 = arith.constant 0 : index
    %c0_0 = arith.constant 0 : index
    %0 = vector.load %arg1[%c0, %c0_0] : memref<16x16xbf16, #tpu.memory_space<vmem>>, vector<16x16xbf16>
    %c0_1 = arith.constant 0 : index
    %c0_2 = arith.constant 0 : index
    %1 = vector.load %arg2[%c0_1, %c0_2] : memref<16x128xbf16, #tpu.memory_space<vmem>>, vector<16x128xbf16>
    %cst = arith.constant dense<0.000000e+00> : vector<16x128xf32>
    %2 = tpu.matmul %0, %1, %cst {dimension_numbers = #tpu.dot_dimension_numbers<[1], [0], [0], [1], [0, 0, 1, 1], [], []>} : vector<16x16xbf16>, vector<16x128xbf16>, vector<16x128xf32> -> vector<16x128xf32>
    %c0_3 = arith.constant 0 : index
    %c0_4 = arith.constant 0 : index
    %c0_5 = arith.constant 0 : index
    %3 = vector.load %arg4[%c0_3, %c0_4, %c0_5] : memref<6x1x128xf32, #tpu.memory_space<vmem>>, vector<1x1x128xf32>
    %4 = vector.shape_cast %3 : vector<1x1x128xf32> to vector<1x128xf32>
    %5 = vector.broadcast %4 : vector<1x128xf32> to vector<16x128xf32>
    %6 = arith.addf %2, %5 : vector<16x128xf32>
    %cst_6 = arith.constant 0.000000e+00 : f32
    %7 = vector.broadcast %cst_6 : f32 to vector<16x128xf32>
    %8 = arith.maximumf %6, %7 : vector<16x128xf32>
    %9 = arith.truncf %8 : vector<16x128xf32> to vector<16x128xbf16>
    %c0_7 = arith.constant 0 : index
    %c0_8 = arith.constant 0 : index
    %c0_9 = arith.constant 0 : index
    %10 = vector.load %arg3[%c0_7, %c0_8, %c0_9] : memref<5x128x128xbf16, #tpu.memory_space<vmem>>, vector<1x128x128xbf16>
    %11 = vector.shape_cast %10 : vector<1x128x128xbf16> to vector<128x128xbf16>
    %c1 = arith.constant 1 : index
    %c0_10 = arith.constant 0 : index
    %c0_11 = arith.constant 0 : index
    %12 = vector.load %arg4[%c1, %c0_10, %c0_11] : memref<6x1x128xf32, #tpu.memory_space<vmem>>, vector<1x1x128xf32>
    %13 = vector.shape_cast %12 : vector<1x1x128xf32> to vector<1x128xf32>
    %cst_12 = arith.constant dense<0.000000e+00> : vector<16x128xf32>
    %14 = tpu.matmul %9, %11, %cst_12 {dimension_numbers = #tpu.dot_dimension_numbers<[1], [0], [0], [1], [0, 0, 1, 1], [], []>} : vector<16x128xbf16>, vector<128x128xbf16>, vector<16x128xf32> -> vector<16x128xf32>
    %15 = vector.broadcast %13 : vector<1x128xf32> to vector<16x128xf32>
    %16 = arith.addf %14, %15 : vector<16x128xf32>
    %cst_13 = arith.constant 0.000000e+00 : f32
    %17 = vector.broadcast %cst_13 : f32 to vector<16x128xf32>
    %18 = arith.maximumf %16, %17 : vector<16x128xf32>
    %19 = arith.truncf %18 : vector<16x128xf32> to vector<16x128xbf16>
    %c1_14 = arith.constant 1 : index
    %c0_15 = arith.constant 0 : index
    %c0_16 = arith.constant 0 : index
    %20 = vector.load %arg3[%c1_14, %c0_15, %c0_16] : memref<5x128x128xbf16, #tpu.memory_space<vmem>>, vector<1x128x128xbf16>
    %21 = vector.shape_cast %20 : vector<1x128x128xbf16> to vector<128x128xbf16>
    %c2 = arith.constant 2 : index
    %c0_17 = arith.constant 0 : index
    %c0_18 = arith.constant 0 : index
    %22 = vector.load %arg4[%c2, %c0_17, %c0_18] : memref<6x1x128xf32, #tpu.memory_space<vmem>>, vector<1x1x128xf32>
    %23 = vector.shape_cast %22 : vector<1x1x128xf32> to vector<1x128xf32>
    %cst_19 = arith.constant dense<0.000000e+00> : vector<16x128xf32>
    %24 = tpu.matmul %19, %21, %cst_19 {dimension_numbers = #tpu.dot_dimension_numbers<[1], [0], [0], [1], [0, 0, 1, 1], [], []>} : vector<16x128xbf16>, vector<128x128xbf16>, vector<16x128xf32> -> vector<16x128xf32>
    %25 = vector.broadcast %23 : vector<1x128xf32> to vector<16x128xf32>
    %26 = arith.addf %24, %25 : vector<16x128xf32>
    %cst_20 = arith.constant 0.000000e+00 : f32
    %27 = vector.broadcast %cst_20 : f32 to vector<16x128xf32>
    %28 = arith.maximumf %26, %27 : vector<16x128xf32>
    %29 = arith.truncf %28 : vector<16x128xf32> to vector<16x128xbf16>
    %c2_21 = arith.constant 2 : index
    %c0_22 = arith.constant 0 : index
    %c0_23 = arith.constant 0 : index
    %30 = vector.load %arg3[%c2_21, %c0_22, %c0_23] : memref<5x128x128xbf16, #tpu.memory_space<vmem>>, vector<1x128x128xbf16>
    %31 = vector.shape_cast %30 : vector<1x128x128xbf16> to vector<128x128xbf16>
    %c3 = arith.constant 3 : index
    %c0_24 = arith.constant 0 : index
    %c0_25 = arith.constant 0 : index
    %32 = vector.load %arg4[%c3, %c0_24, %c0_25] : memref<6x1x128xf32, #tpu.memory_space<vmem>>, vector<1x1x128xf32>
    %33 = vector.shape_cast %32 : vector<1x1x128xf32> to vector<1x128xf32>
    %cst_26 = arith.constant dense<0.000000e+00> : vector<16x128xf32>
    %34 = tpu.matmul %29, %31, %cst_26 {dimension_numbers = #tpu.dot_dimension_numbers<[1], [0], [0], [1], [0, 0, 1, 1], [], []>} : vector<16x128xbf16>, vector<128x128xbf16>, vector<16x128xf32> -> vector<16x128xf32>
    %35 = vector.broadcast %33 : vector<1x128xf32> to vector<16x128xf32>
    %36 = arith.addf %34, %35 : vector<16x128xf32>
    %cst_27 = arith.constant 0.000000e+00 : f32
    %37 = vector.broadcast %cst_27 : f32 to vector<16x128xf32>
    %38 = arith.maximumf %36, %37 : vector<16x128xf32>
    %39 = arith.truncf %38 : vector<16x128xf32> to vector<16x128xbf16>
    %c3_28 = arith.constant 3 : index
    %c0_29 = arith.constant 0 : index
    %c0_30 = arith.constant 0 : index
    %40 = vector.load %arg3[%c3_28, %c0_29, %c0_30] : memref<5x128x128xbf16, #tpu.memory_space<vmem>>, vector<1x128x128xbf16>
    %41 = vector.shape_cast %40 : vector<1x128x128xbf16> to vector<128x128xbf16>
    %c4 = arith.constant 4 : index
    %c0_31 = arith.constant 0 : index
    %c0_32 = arith.constant 0 : index
    %42 = vector.load %arg4[%c4, %c0_31, %c0_32] : memref<6x1x128xf32, #tpu.memory_space<vmem>>, vector<1x1x128xf32>
    %43 = vector.shape_cast %42 : vector<1x1x128xf32> to vector<1x128xf32>
    %cst_33 = arith.constant dense<0.000000e+00> : vector<16x128xf32>
    %44 = tpu.matmul %39, %41, %cst_33 {dimension_numbers = #tpu.dot_dimension_numbers<[1], [0], [0], [1], [0, 0, 1, 1], [], []>} : vector<16x128xbf16>, vector<128x128xbf16>, vector<16x128xf32> -> vector<16x128xf32>
    %45 = vector.broadcast %43 : vector<1x128xf32> to vector<16x128xf32>
    %46 = arith.addf %44, %45 : vector<16x128xf32>
    %cst_34 = arith.constant 0.000000e+00 : f32
    %47 = vector.broadcast %cst_34 : f32 to vector<16x128xf32>
    %48 = arith.maximumf %46, %47 : vector<16x128xf32>
    %49 = arith.truncf %48 : vector<16x128xf32> to vector<16x128xbf16>
    %c4_35 = arith.constant 4 : index
    %c0_36 = arith.constant 0 : index
    %c0_37 = arith.constant 0 : index
    %50 = vector.load %arg3[%c4_35, %c0_36, %c0_37] : memref<5x128x128xbf16, #tpu.memory_space<vmem>>, vector<1x128x128xbf16>
    %51 = vector.shape_cast %50 : vector<1x128x128xbf16> to vector<128x128xbf16>
    %c5 = arith.constant 5 : index
    %c0_38 = arith.constant 0 : index
    %c0_39 = arith.constant 0 : index
    %52 = vector.load %arg4[%c5, %c0_38, %c0_39] : memref<6x1x128xf32, #tpu.memory_space<vmem>>, vector<1x1x128xf32>
    %53 = vector.shape_cast %52 : vector<1x1x128xf32> to vector<1x128xf32>
    %cst_40 = arith.constant dense<0.000000e+00> : vector<16x128xf32>
    %54 = tpu.matmul %49, %51, %cst_40 {dimension_numbers = #tpu.dot_dimension_numbers<[1], [0], [0], [1], [0, 0, 1, 1], [], []>} : vector<16x128xbf16>, vector<128x128xbf16>, vector<16x128xf32> -> vector<16x128xf32>
    %55 = vector.broadcast %53 : vector<1x128xf32> to vector<16x128xf32>
    %56 = arith.addf %54, %55 : vector<16x128xf32>
    %57 = arith.truncf %56 : vector<16x128xf32> to vector<16x128xbf16>
    %c0_41 = arith.constant 0 : index
    %c0_42 = arith.constant 0 : index
    %58 = vector.load %arg5[%c0_41, %c0_42] : memref<16x128xbf16, #tpu.memory_space<vmem>>, vector<16x128xbf16>
    tpu.vector_store %arg5[%c0_41, %c0_42], %57 {strides = array<i32>} : memref<16x128xbf16, #tpu.memory_space<vmem>>, vector<16x128xbf16>,
    return
  }
  func.func @transform_0(%arg0: i32) -> (i32, i32) {
    %c0_i32 = arith.constant 0 : i32
    %c0_i32_0 = arith.constant 0 : i32
    return %arg0, %c0_i32 : i32, i32
  }
  func.func @transform_1(%arg0: i32) -> (i32, i32) {
    %c0_i32 = arith.constant 0 : i32
    %c0_i32_0 = arith.constant 0 : i32
    %c0_i32_1 = arith.constant 0 : i32
    return %c0_i32, %c0_i32_0 : i32, i32
  }
  func.func @transform_2(%arg0: i32) -> (i32, i32, i32) {
    %c0_i32 = arith.constant 0 : i32
    %c0_i32_0 = arith.constant 0 : i32
    %c0_i32_1 = arith.constant 0 : i32
    %c0_i32_2 = arith.constant 0 : i32
    return %c0_i32, %c0_i32_0, %c0_i32_1 : i32, i32, i32
  }
  func.func @transform_3(%arg0: i32) -> (i32, i32, i32) {
    %c0_i32 = arith.constant 0 : i32
    %c0_i32_0 = arith.constant 0 : i32
    %c0_i32_1 = arith.constant 0 : i32
    %c0_i32_2 = arith.constant 0 : i32
    return %c0_i32, %c0_i32_0, %c0_i32_1 : i32, i32, i32
  }
  func.func @transform_4(%arg0: i32) -> (i32, i32) {
    %c0_i32 = arith.constant 0 : i32
    %c0_i32_0 = arith.constant 0 : i32
    return %arg0, %c0_i32 : i32, i32
  }
}

</mosaic_0001>

<bundles_post_ra>
// kernel: generator_pallas.1
= control target key start
LH: loop header
LB: loop body
LE: loop exit
PB: predicated region body
PF: predicated region fallthrough
CT: control target
= control target key end

     0   :  { %9 = vsyncpa [#allocation3], 0  ;;  %s1611_s0 = inlined_call_operand.vmem [shape: bf16[32,16], index: 0, kind: input, shape index: {}]   ;;  %s1612_s1 = inlined_call_operand.vmem [shape: bf16[16,128], index: 1, kind: input, shape index: {}]   ;;  %s1613_s2 = inlined_call_operand.hbm [shape: bf16[5,128,128], index: 2, kind: input, shape index: {}]   ;;  %s1614_s3 = inlined_call_operand.vmem [shape: f32[6,1,128], index: 3, kind: input, shape index: {}]   ;;  %s1615_s4 = inlined_call_operand.hbm [shape: bf16[32,128], index: 4, kind: output, shape index: {}]  }
   0x1   :  { %10 = vsyncpa [#allocation4], 0 }
   0x2   :  { %12 = vsyncpa [#allocation4 + $0x1], 0  ;;  %s1418_s15 = smov 0   ;;  %s1420_s16 = smov 0  }
   0x3   :  { %s1422_s17 = smov 0   ;;  %s1424_s18 = smov 0  }
   0x4 LB: > { %s1439_s19 = sadd.s32 4294967295, %s1383_s18   ;;  %s964_s20 = sadd.s32 4294967294, %s1383_s18   ;;  %s1383_s18 = sphi %s1424_s18, %s1623_s18   ;;  %s1379_s17 = sphi %s1422_s17, %s1622_s17   ;;  %s1375_s16 = sphi %s1420_s16, %s1621_s16   ;;  %s1371_s15 = sphi %s1418_s15, %s1620_s15  }
   0x5   : > { %s1443_s21 = sadd.s32 1, %s1383_s18   ;;  %s114_s22 = sadd.s32 1, %s1379_s17 }
   0x6   : > { %s111_s23 = ssub.s32 %s1383_s18, %s1443_s21  ;;  %p124_p0 = scmp.ne.s32.totalorder %s1379_s17, %s1375_s16 }
   0x7   : > { %p112_p1 = scmp.eq.s32.totalorder %s111_s23, 0  ;;  %p125_p2 = scmp.eq.s32.totalorder %s1439_s19, 1 }
   0x8   : > { %p130_p3 = scmp.ne.s32.totalorder %s1375_s16, %s1371_s15  ;;  %p131_p4 = scmp.eq.s32.totalorder %s964_s20, 1 }
   0x9   : > { %s1454_s24 = scalar_select %p112_p1, %s1379_s17, %s114_s22  }
   0xa   : > { %p1456_p5 = por %p125_p2, %p124_p0  ;;  %p1460_p6 = por %p131_p4, %p130_p3 }
   0xb   : > { %p965_p7 = scmp.ge.s32.totalorder %s1383_s18, 1  ;;  %p138_p8 = scmp.lt.s32.totalorder %s1383_s18, 3 }
   0xc   : > { %s1617_s26 = scalar_select %p1460_p6, 1, 0 }
   0xd   : > { %p1209_p9 = scmp.eq.s32.totalorder %s1439_s19, 0  ;;  %p1467_p10 = pnand %p965_p7, %p138_p8 }
   0xe   : > { %s1385_s28 = smov [#allocation2]  }
   0xf   : > { %s153_s29 = sshll.u32 %s1385_s28, 4  ;;  %p1201_p11 = pneg %p1467_p10  ;;  %s154_s29 = int_to_ptr.vmem [resolvable:$true] %s153_s29 }
  0x10   : > { %s1304_s30 = scalar_lea.vmem %s154_s29, 5120  ;;  %p1312_p3 = scmp.lt.s32.totalorder %s154_s29, %s154_s29 }
  0x11   : > { %p1202_p12 = pnand %p1209_p9, %p1201_p11  ;;  %p1305_p0 = scmp.ne.s32.totalorder %s154_s29, %s1304_s30 }
  0x12   : > { %p1313_p4 = scmp.lt.s32.totalorder %s1304_s30, %s1304_s30 }
  0x13   : > { %p1295_p13 = pneg %p1202_p12 }
  0x14   : > { %p1314_p6 = por %p1313_p4, %p1312_p3 }
  0x15   : > { %p1307_p1 = pnand %p1305_p0, %p1295_p13 }
  0x17   : > { %p1308_p2 = pneg %p1307_p1 }
  0x19   : > { %p1315_p7 = pnand %p1314_p6, %p1308_p2 }
  0x1b   : > { %1318 = shalt.err (!%p1315_p7)
}
  0x1c   : > { %s1386_s5 = smov 64   ;;  %s1387_s6 = smov 4  }
  0x1d   : > { %1204 = dma.hbm_to_vmem [thread:$0]  (!%p1202_p12), %s1613_s2, 5120, %s154_s29, [#allocation3], %s1386_s5, %s1386_s5, %s1387_s6  }
  0x1e   : > { %181 = sbr.rel (%p1467_p10) target bundleno = 1273 (0x4f9), region = 36 }
  0x23   : > { %1362 = dma.done.wait (%p1209_p9), [#allocation3], 5120  }
  0x24   : > { %1364 = vsyncadd (%p1209_p9), [#allocation3], 4294962176  ;;  %s971_s9 = sshll.u32 %s1439_s19, 1  ;;  %v1388_v0 = vmov 0.0   ;;  %vm1389_vm0 = vmmov 0   ;;  %v1251_v1 = vld [vmem:[%s1612_s1] sm:$0xff]  }
  0x25   : > { %1089 = vmatprep.subr.bf16.mxu0 %v1388_v0  ;;  %1091 = vmatprep.mubr.msk.bf16.mxu0 %vm1389_vm0, %v1388_v0  ;;  %p208_p6 = scmp.lt.s32.totalorder %s971_s9, 3  ;;  %vm237_vm1 = vcmask 130048   ;;  %v1253_v3 = vld [vmem:[#allocation2 + $0x38] sm:$0xff]   ;;  %v1254_v4 = vld [vmem:[#allocation2 + $0x30] sm:$0xff]   ;;  %v1255_v5 = vld [vmem:[#allocation2 + $0x28] sm:$0xff]   ;;  %s1036_s20 = sshll.u32 %s1439_s19, 7 }
  0x26   : > { %1095 = vmatprep.subr.bf16.mxu1 %v1388_v0  ;;  %1111 = vmatprep.mubr.msk.bf16.mxu1 %vm1389_vm0, %v1388_v0  ;;  %v1256_v6 = vld [vmem:[#allocation2 + $0x20] sm:$0xff]   ;;  %v1257_v7 = vld [vmem:[#allocation2 + $0x18] sm:$0xff]   ;;  %v1258_v8 = vld [vmem:[#allocation2 + $0x10] sm:$0xff]   ;;  %s1569_s27 = scalar_lea.hbm %s1615_s4, %s1036_s20  ;;  %s1390_s19 = smov [#allocation5]  }
  0x27   : > { %s1625_s9 = smov (!%p208_p6, %s971_s9), 3  ;;  %1090 = vmatpush3.bf16.msra.mxu0 %v1251_v1  ;;  %1096 = vmatpush3.bf16.msra.mxu1 %v1253_v3  ;;  %v1259_v9 = vld [vmem:[#allocation2 + $0x8] sm:$0xff]   ;;  %v1260_v10 = vld [vmem:[#allocation2] sm:$0xff]   ;;  %v1261_v11 = vld [vmem:[#allocation2 + $0x78] sm:$0xff]   ;;  %s1323_s30 = sshll.u32 %s1390_s19, 4  ;;  %s1324_s30 = int_to_ptr.vmem [resolvable:$false] %s1323_s30 }
  0x28   : > { %s972_s10 = sshll.u32 %s1625_s9, 2  ;;  %1115 = vmatprep.subr.bf16.mxu0 %v1388_v0  ;;  %1097 = vmatprep.subr.bf16.mxu1 %v1388_v0  ;;  %v1262_v12 = vld [vmem:[#allocation2 + $0x70] sm:$0xff]   ;;  %v1263_v13 = vld [vmem:[#allocation2 + $0x68] sm:$0xff]   ;;  %v1264_v14 = vld [vmem:[#allocation2 + $0x60] sm:$0xff]   ;;  %s204_s9 = sand.u32 1, %s1375_s16  }
  0x29   : > { %s211_s13 = scalar_lea.vmem %s1611_s0, %s972_s10  ;;  %v1265_v15 = vld [vmem:[#allocation2 + $0x58] sm:$0xff]   ;;  %v973_v16 = vld [vmem:[%s1614_s3] ss:$0 sm:$0xff]  ;;  %v1266_v26 = vld [vmem:[#allocation2 + $0x50] sm:$0xff]   ;;  %s970_s10 = sshll.u32 %s204_s9, 3 }
  0x2a   : > { %v1252_v2 = vld [vmem:[%s211_s13] sm:$0xff]   ;;  %v1267_v27 = vld [vmem:[#allocation2 + $0x48] sm:$0xff]   ;;  %v1269_v29 = vld [vmem:[#allocation2 + $0xb8] sm:$0xff]   ;;  %s206_s13 = scalar_lea.vmem [#allocation5], %s970_s10  ;;  %s1571_s28 = scalar_lea.sflag [#allocation4], %s204_s9 }
  0x2b   : > { %1092 = vmatmul.mubr.msk.bf16.vlgmr.msra.gmra.mxu0 %vm237_vm1, %v1252_v2  ;;  %1098 = vmatpush3.bf16.msra.mxu1 %v1254_v4  ;;  %v1268_v28 = vld [vmem:[#allocation2 + $0x40] sm:$0xff]   ;;  %v1270_v30 = vld [vmem:[#allocation2 + $0xb0] sm:$0xff]   ;;  %v1271_v31 = vld [vmem:[#allocation2 + $0xa8] sm:$0xff]   ;;  %s890_s14 = sshll.u32 %s206_s13, 4  ;;  %s1325_s5 = scalar_lea.vmem %s1324_s30, 256  ;;  %s1564_s14 = int_to_ptr.vmem [resolvable:$true] %s890_s14 }
  0x2c   : > { %1131 = vmatprep.mubr.msk.bf16.mxu0 %vm1389_vm0, %v1388_v0  ;;  %1099 = vmatprep.subr.bf16.mxu1 %v1388_v0  ;;  %v1272_v32 = vld [vmem:[#allocation2 + $0xa0] sm:$0xff]   ;;  %v1273_v33 = vld [vmem:[#allocation2 + $0x98] sm:$0xff]   ;;  %v1274_v44 = vld [vmem:[#allocation2 + $0x90] sm:$0xff]   ;;  %s1319_s29 = scalar_lea.vmem %s1564_s14, 128  ;;  %p1326_p11 = scmp.lt.s32.totalorder %s1564_s14, %s1324_s30 }
  0x2d   : > { %1116 = vmatpush3.bf16.msra.mxu0 %v1261_v11  ;;  %v978_v34 = vld [vmem:[%s1614_s3 + $0x1] ss:$0 sm:$0xff]  ;;  %v1275_v45 = vld [vmem:[#allocation2 + $0x88] sm:$0xff]   ;;  %v1277_v47 = vld [vmem:[#allocation2 + $0xf8] sm:$0xff]   ;;  %p1320_p8 = scmp.ne.s32.totalorder %s1564_s14, %s1319_s29  ;;  %p1327_p12 = scmp.lt.s32.totalorder %s1325_s5, %s1319_s29 }
  0x2e   : > { %1117 = vmatprep.subr.bf16.mxu0 %v1388_v0  ;;  %v1276_v46 = vld [vmem:[#allocation2 + $0x80] sm:$0xff]   ;;  %v1278_v48 = vld [vmem:[#allocation2 + $0xf0] sm:$0xff]   ;;  %v1279_v49 = vld [vmem:[#allocation2 + $0xe8] sm:$0xff]  }
  0x2f   : > { %1100 = vmatpush3.bf16.msra.mxu1 %v1255_v5  ;;  %v1280_v50 = vld [vmem:[#allocation2 + $0xe0] sm:$0xff]   ;;  %v1281_v51 = vld [vmem:[#allocation2 + $0xd8] sm:$0xff]   ;;  %v1282_v62 = vld [vmem:[#allocation2 + $0xd0] sm:$0xff]   ;;  %p1321_p9 = pnand %p1320_p8, %p1456_p5  ;;  %p1328_p13 = por %p1327_p12, %p1326_p11 }
  0x30   : > { %1101 = vmatprep.subr.bf16.mxu1 %v1388_v0  ;;  %v988_v52 = vld [vmem:[%s1614_s3 + $0x2] ss:$0 sm:$0xff]  ;;  %v1283_v63 = vld [vmem:[#allocation2 + $0xc8] sm:$0xff]   ;;  %v1285_v2 = vld [vmem:[#allocation2 + $0x138] sm:$0xff]  }
  0x31   : > { %1118 = vmatpush3.bf16.msra.mxu0 %v1262_v12  ;;  %v1284_v1 = vld [vmem:[#allocation2 + $0xc0] sm:$0xff]   ;;  %v1286_v3 = vld [vmem:[#allocation2 + $0x130] sm:$0xff]   ;;  %v1287_v4 = vld [vmem:[#allocation2 + $0x128] sm:$0xff]   ;;  %p1322_p10 = pneg %p1321_p9 }
  0x32   : > { %1119 = vmatprep.subr.bf16.mxu0 %v1388_v0  ;;  %v1288_v5 = vld [vmem:[#allocation2 + $0x120] sm:$0xff]  }
  0x33   : > { %1102 = vmatpush3.bf16.msra.mxu1 %v1256_v6  ;;  %v1289_v6 = vld [vmem:[#allocation2 + $0x118] sm:$0xff]   ;;  %p1329_p0 = pnand %p1328_p13, %p1322_p10 }
  0x34   : > { %1103 = vmatprep.subr.bf16.mxu1 %v1388_v0 }
  0x35   : > { %1120 = vmatpush3.bf16.msra.mxu0 %v1263_v13 }
  0x36   : > { %1121 = vmatprep.subr.bf16.mxu0 %v1388_v0 }
  0x37   : > { %1104 = vmatpush3.bf16.msra.mxu1 %v1257_v7  ;;  %v998_v7 = vld [vmem:[%s1614_s3 + $0x3] ss:$0 sm:$0xff] }
  0x38   : > { %1105 = vmatprep.subr.bf16.mxu1 %v1388_v0 }
  0x39   : > { %1122 = vmatpush3.bf16.msra.mxu0 %v1264_v14 }
  0x3a   : > { %1123 = vmatprep.subr.bf16.mxu0 %v1388_v0 }
  0x3b   : > { %1106 = vmatpush3.bf16.msra.mxu1 %v1258_v8 }
  0x3c   : > { %1107 = vmatprep.subr.bf16.mxu1 %v1388_v0 }
  0x3d   : > { %1124 = vmatpush3.bf16.msra.mxu0 %v1265_v15 }
  0x3e   : > { %1125 = vmatprep.subr.bf16.mxu0 %v1388_v0 }
  0x3f   : > { %1108 = vmatpush3.bf16.msra.mxu1 %v1259_v9 }
  0x40   : > { %1109 = vmatprep.subr.bf16.mxu1 %v1388_v0 }
  0x41   : > { %1126 = vmatpush3.bf16.msra.mxu0 %v1266_v26 }
  0x42   : > { %1127 = vmatprep.subr.bf16.mxu0 %v1388_v0 }
  0x43   : > { %1110 = vmatpush3.bf16.msra.mxu1 %v1260_v10 }
  0x44   : > { %1135 = vmatprep.subr.bf16.mxu1 %v1388_v0 }
  0x45   : > { %1128 = vmatpush3.bf16.msra.mxu0 %v1267_v27 }
  0x46   : > { %1129 = vmatprep.subr.bf16.mxu0 %v1388_v0 }
  0x49   : > { %1130 = vmatpush3.bf16.msra.mxu0 %v1268_v28 }
  0x4a   : > { %1155 = vmatprep.subr.bf16.mxu0 %v1388_v0 }
  0xeb   : > { %v275_v17 = vpop.f32.mrf.mxu0 }
  0xec   : > { %v276_v19 = vadd.f32 %v973_v16, %v275_v17  ;;  %v1290_v17 = vld [vmem:[#allocation2 + $0x110] sm:$0xff]  }
  0xed   : > { %v1093_v18 = vpop.f32.mrf.mxu0 }
  0xee   : > { %v282_v23 = vmax.f32 %v276_v19, 0.0  ;;  %v1291_v18 = vld [vmem:[#allocation2 + $0x108] sm:$0xff]   ;;  %v1292_v19 = vld [vmem:[#allocation2 + $0x100] sm:$0xff]  }
  0xef   : > { %v278_v20 = vpop.f32.mrf.mxu0 }
  0xf0   : > { %v279_v21 = vadd.f32 %v973_v16, %v278_v20  ;;  %v1008_v20 = vld [vmem:[%s1614_s3 + $0x4] ss:$0 sm:$0xff] }
  0xf1   : > { %v1094_v22 = vpop.f32.mrf.mxu0 }
  0xf2   : > { %v283_v24 = vmax.f32 %v279_v21, 0.0 }
  0xf4   : > { %v284_v25 = vpack.c.bf16 %v283_v24, %v282_v23 }
  0xf6   : > { %1112 = vmatmul.mubr.bf16.vlgmr.msra.gmra.mxu1 %v284_v25 }
  0xf7   : > { %1151 = vmatprep.mubr.msk.bf16.mxu1 %vm1389_vm0, %v1388_v0  ;;  %1136 = vmatpush3.bf16.msra.mxu1 %v1269_v29 }
  0xf8   : > { %1137 = vmatprep.subr.bf16.mxu1 %v1388_v0 }
  0xfb   : > { %1138 = vmatpush3.bf16.msra.mxu1 %v1270_v30  ;;  %v1018_v30 = vld [vmem:[%s1614_s3 + $0x5] ss:$0 sm:$0xff] }
  0xfc   : > { %1139 = vmatprep.subr.bf16.mxu1 %v1388_v0 }
  0xff   : > { %1140 = vmatpush3.bf16.msra.mxu1 %v1271_v31 }
 0x100   : > { %1141 = vmatprep.subr.bf16.mxu1 %v1388_v0 }
 0x103   : > { %1142 = vmatpush3.bf16.msra.mxu1 %v1272_v32 }
 0x104   : > { %1143 = vmatprep.subr.bf16.mxu1 %v1388_v0 }
 0x107   : > { %1144 = vmatpush3.bf16.msra.mxu1 %v1273_v33 }
 0x108   : > { %1145 = vmatprep.subr.bf16.mxu1 %v1388_v0 }
 0x10b   : > { %1146 = vmatpush3.bf16.msra.mxu1 %v1274_v44 }
 0x10c   : > { %1147 = vmatprep.subr.bf16.mxu1 %v1388_v0 }
 0x10f   : > { %1148 = vmatpush3.bf16.msra.mxu1 %v1275_v45 }
 0x110   : > { %1149 = vmatprep.subr.bf16.mxu1 %v1388_v0 }
 0x113   : > { %1150 = vmatpush3.bf16.msra.mxu1 %v1276_v46 }
 0x114   : > { %1175 = vmatprep.subr.bf16.mxu1 %v1388_v0 }
 0x1b6   : > { %v391_v35 = vpop.f32.mrf.mxu1 }
 0x1b7   : > { %v392_v37 = vadd.f32 %v978_v34, %v391_v35 }
 0x1b8   : > { %v1113_v36 = vpop.f32.mrf.mxu1 }
 0x1b9   : > { %v398_v41 = vmax.f32 %v392_v37, 0.0 }
 0x1ba   : > { %v394_v38 = vpop.f32.mrf.mxu1 }
 0x1bb   : > { %v395_v39 = vadd.f32 %v978_v34, %v394_v38 }
 0x1bc   : > { %v1114_v40 = vpop.f32.mrf.mxu1 }
 0x1bd   : > { %v399_v42 = vmax.f32 %v395_v39, 0.0 }
 0x1bf   : > { %v400_v43 = vpack.c.bf16 %v399_v42, %v398_v41 }
 0x1c1   : > { %1132 = vmatmul.mubr.bf16.vlgmr.msra.gmra.mxu0 %v400_v43 }
 0x1c2   : > { %1171 = vmatprep.mubr.msk.bf16.mxu0 %vm1389_vm0, %v1388_v0  ;;  %1156 = vmatpush3.bf16.msra.mxu0 %v1277_v47 }
 0x1c3   : > { %1157 = vmatprep.subr.bf16.mxu0 %v1388_v0 }
 0x1c6   : > { %1158 = vmatpush3.bf16.msra.mxu0 %v1278_v48 }
 0x1c7   : > { %1159 = vmatprep.subr.bf16.mxu0 %v1388_v0 }
 0x1ca   : > { %1160 = vmatpush3.bf16.msra.mxu0 %v1279_v49 }
 0x1cb   : > { %1161 = vmatprep.subr.bf16.mxu0 %v1388_v0 }
 0x1ce   : > { %1162 = vmatpush3.bf16.msra.mxu0 %v1280_v50 }
 0x1cf   : > { %1163 = vmatprep.subr.bf16.mxu0 %v1388_v0 }
 0x1d2   : > { %1164 = vmatpush3.bf16.msra.mxu0 %v1281_v51 }
 0x1d3   : > { %1165 = vmatprep.subr.bf16.mxu0 %v1388_v0 }
 0x1d6   : > { %1166 = vmatpush3.bf16.msra.mxu0 %v1282_v62 }
 0x1d7   : > { %1167 = vmatprep.subr.bf16.mxu0 %v1388_v0 }
 0x1da   : > { %1168 = vmatpush3.bf16.msra.mxu0 %v1283_v63 }
 0x1db   : > { %1169 = vmatprep.subr.bf16.mxu0 %v1388_v0 }
 0x1de   : > { %1170 = vmatpush3.bf16.msra.mxu0 %v1284_v1 }
 0x281   : > { %v508_v53 = vpop.f32.mrf.mxu0 }
 0x282   : > { %v509_v55 = vadd.f32 %v988_v52, %v508_v53 }
 0x283   : > { %v1133_v54 = vpop.f32.mrf.mxu0 }
 0x284   : > { %v515_v59 = vmax.f32 %v509_v55, 0.0 }
 0x285   : > { %v511_v56 = vpop.f32.mrf.mxu0 }
 0x286   : > { %v512_v57 = vadd.f32 %v988_v52, %v511_v56 }
 0x287   : > { %v1134_v58 = vpop.f32.mrf.mxu0 }
 0x288   : > { %v516_v60 = vmax.f32 %v512_v57, 0.0 }
 0x28a   : > { %v517_v61 = vpack.c.bf16 %v516_v60, %v515_v59 }
 0x28c   : > { %1152 = vmatmul.mubr.bf16.vlgmr.msra.gmra.mxu1 %v517_v61 }
 0x28d   : > { %1191 = vmatprep.mubr.msk.bf16.mxu1 %vm1389_vm0, %v1388_v0  ;;  %1176 = vmatpush3.bf16.msra.mxu1 %v1285_v2 }
 0x28e   : > { %1177 = vmatprep.subr.bf16.mxu1 %v1388_v0 }
 0x291   : > { %1178 = vmatpush3.bf16.msra.mxu1 %v1286_v3 }
 0x292   : > { %1179 = vmatprep.subr.bf16.mxu1 %v1388_v0 }
 0x295   : > { %1180 = vmatpush3.bf16.msra.mxu1 %v1287_v4 }
 0x296   : > { %1181 = vmatprep.subr.bf16.mxu1 %v1388_v0 }
 0x299   : > { %1182 = vmatpush3.bf16.msra.mxu1 %v1288_v5 }
 0x29a   : > { %1183 = vmatprep.subr.bf16.mxu1 %v1388_v0 }
 0x29d   : > { %1184 = vmatpush3.bf16.msra.mxu1 %v1289_v6 }
 0x29e   : > { %1185 = vmatprep.subr.bf16.mxu1 %v1388_v0 }
 0x2a1   : > { %1186 = vmatpush3.bf16.msra.mxu1 %v1290_v17 }
 0x2a2   : > { %1187 = vmatprep.subr.bf16.mxu1 %v1388_v0 }
 0x2a5   : > { %1188 = vmatpush3.bf16.msra.mxu1 %v1291_v18 }
 0x2a6   : > { %1189 = vmatprep.subr.bf16.mxu1 %v1388_v0 }
 0x2a9   : > { %1190 = vmatpush3.bf16.msra.mxu1 %v1292_v19 }
 0x34c   : > { %v625_v8 = vpop.f32.mrf.mxu1 }
 0x34d   : > { %v626_v10 = vadd.f32 %v998_v7, %v625_v8 }
 0x34e   : > { %v1153_v9 = vpop.f32.mrf.mxu1 }
 0x34f   : > { %v632_v14 = vmax.f32 %v626_v10, 0.0 }
 0x350   : > { %v628_v11 = vpop.f32.mrf.mxu1 }
 0x351   : > { %v629_v12 = vadd.f32 %v998_v7, %v628_v11 }
 0x352   : > { %v1154_v13 = vpop.f32.mrf.mxu1 }
 0x353   : > { %v633_v15 = vmax.f32 %v629_v12, 0.0 }
 0x355   : > { %v634_v16 = vpack.c.bf16 %v633_v15, %v632_v14 }
 0x357   : > { %1172 = vmatmul.mubr.bf16.vlgmr.msra.gmra.mxu0 %v634_v16 }
 0x417   : > { %v742_v21 = vpop.f32.mrf.mxu0 }
 0x418   : > { %v743_v23 = vadd.f32 %v1008_v20, %v742_v21 }
 0x419   : > { %v1173_v22 = vpop.f32.mrf.mxu0 }
 0x41a   : > { %v749_v27 = vmax.f32 %v743_v23, 0.0 }
 0x41b   : > { %v745_v24 = vpop.f32.mrf.mxu0 }
 0x41c   : > { %v746_v25 = vadd.f32 %v1008_v20, %v745_v24 }
 0x41d   : > { %v1174_v26 = vpop.f32.mrf.mxu0 }
 0x41e   : > { %v750_v28 = vmax.f32 %v746_v25, 0.0 }
 0x420   : > { %v751_v29 = vpack.c.bf16 %v750_v28, %v749_v27 }
 0x422   : > { %1192 = vmatmul.mubr.bf16.vlgmr.msra.gmra.mxu1 %v751_v29 }
 0x4e2   : > { %v859_v0 = vpop.f32.mrf.mxu1 }
 0x4e3   : > { %v860_v33 = vadd.f32 %v1018_v30, %v859_v0 }
 0x4e4   : > { %v1193_v31 = vpop.f32.mrf.mxu1 }
 0x4e6   : > { %v862_v32 = vpop.f32.mrf.mxu1 }
 0x4e7   : > { %v863_v34 = vadd.f32 %v1018_v30, %v862_v32 }
 0x4e8   : > { %v1194_v35 = vpop.f32.mrf.mxu1 }
 0x4e9   : > { %v1040_v36 = vpack.c.bf16 %v863_v34, %v860_v33 }
 0x4eb   : > { %1041 = vst [vmem:[%s206_s13] sm:$0xff] %v1040_v36  }
 0x4ec   : > { %1332 = shalt.err (!%p1329_p0)
}
 0x4ed   : > { %s1333_s6 = scalar_lea.hbm %s1569_s27, 128  ;;  %s1337_s9 = scalar_lea.hbm %s1615_s4, 256 }
 0x4ee   : > { %p1334_p1 = scmp.ne.s32.totalorder %s1569_s27, %s1333_s6  ;;  %p1338_p4 = scmp.lt.s32.totalorder %s1569_s27, %s1615_s4 }
 0x4ef   : > { %p1339_p7 = scmp.lt.s32.totalorder %s1337_s9, %s1333_s6 }
 0x4f0   : > { %p1335_p2 = pnand %p1334_p1, %p1456_p5 }
 0x4f1   : > { %p1340_p6 = por %p1339_p7, %p1338_p4 }
 0x4f2   : > { %p1336_p3 = pneg %p1335_p2 }
 0x4f4   : > { %p1341_p8 = pnand %p1340_p6, %p1336_p3 }
 0x4f6   : > { %1344 = shalt.err (!%p1341_p8)
}
 0x4f7   : > { %s1391_s12 = smov 64   ;;  %s1392_s13 = smov 4  }
 0x4f8   : > { %1199 = dma.vmem_to_hbm [thread:$0]  (%p1456_p5), %s1564_s14, 128, %s1569_s27, %s1571_s28, %s1391_s12, %s1391_s12, %s1392_s13  }
 0x4f9 PF: > { %p1211_p9 = scmp.ge.s32.totalorder %s1383_s18, 2  ;;  %s905_s20 = sand.u32 1, %s1371_s15  }
 0x4fa   : > { %p1619_p10 = scmp.ne.s32.totalorder %s1617_s26, 0  ;;  %s906_s22 = scalar_lea.sflag [#allocation4], %s905_s20 }
 0x4fc   : > { %p1206_p11 = pnand %p1211_p9, %p1619_p10 }
 0x4fe   : > { %p1207_p12 = pneg %p1206_p11 }
 0x500   : > { %1366 = dma.done.wait (%p1207_p12), %s906_s22, 128  }
 0x501   : > { %1368 = vsyncadd (%p1207_p12), %s906_s22, 4294967168  ;;  %p15_p13 = scmp.ge.s32.totalorder %s1443_s21, 4   ;;  %s1620_s15 = smov %s1375_s16 }
 0x502   : > { %s1621_s16 = smov %s1379_s17  ;;  %s1622_s17 = smov %s1454_s24 }
 0x503   : > { %s1623_s18 = smov %s1443_s21  ;;  %17 = sbr.rel (!%p15_p13) target bundleno = 4 (0x4), region = 85 }
 0x508   :  { %911 = vsyncpa [#allocation3], 1 }
 0x509   :  { %913 = vsyncpa [#allocation3 + $0x1], 1 }
 0x50a   :  { %914 = vsyncpa [#allocation4], 1 }
 0x50b   :  { %916 = vsyncpa [#allocation4 + $0x1], 1 }

</bundles_post_ra>
